<compile_context>
chip_gen: v5e
topology: v5e:2x2
jax: 0.10.0
libtpu: 0.0.40
codegen_flags: <defaults>
</compile_context>

<pallas_src>
import jax
import jax.numpy as jnp
from jax import lax
from jax.experimental import pallas as pl
from jax.experimental.pallas import tpu as pltpu

INPUT_DIM = 3
LINEAR1 = 64
M_DIM = 32
K_DIM = 16
V_DIM = 16
QKV_DIM = K_DIM + K_DIM + V_DIM  # 48

# ---- packed parameter slab layout (rows x 128 lanes, f32) -------------------
_ROW_W1 = 0       # rows 0:3    cols 0:64    feature_extractor[0].weight (in,out)
_ROW_B1 = 3       # row  3      cols 0:64    feature_extractor[0].bias
_ROW_BQKV = 4     # row  4      cols 0:48    [bq*scale | bk | bv]
_ROW_B2 = 5       # row  5      cols 0:32    feature_extractor[2].bias
_ROW_WC = 6       # row  6      cols 0:16    classifier weight, stored as a row
_ROW_BC = 7       # row  7      col  0       classifier bias
_ROW_W2 = 8       # rows 8:72   cols 0:32    feature_extractor[2].weight (in,out)
_ROW_WQKV = 72    # rows 72:104 cols 0:48    [wq*scale | wk | wv]
PACK_ROWS = 104
PACK_LANES = 128


def _mt_clip_kernel(x_ref, p_ref, yprob_ref, a_ref):
    """One bag per grid step: x_ref (N,3) -> yprob_ref (1,1), a_ref (1,N)."""
    p = p_ref
    w1 = p[_ROW_W1:_ROW_W1 + INPUT_DIM, 0:LINEAR1]            # (3, 64)
    b1 = p[_ROW_B1:_ROW_B1 + 1, 0:LINEAR1]                    # (1, 64)
    w2 = p[_ROW_W2:_ROW_W2 + LINEAR1, 0:M_DIM]                # (64, 32)
    b2 = p[_ROW_B2:_ROW_B2 + 1, 0:M_DIM]                      # (1, 32)
    wqkv = p[_ROW_WQKV:_ROW_WQKV + M_DIM, 0:QKV_DIM]          # (32, 48), Q pre-scaled
    bqkv = p[_ROW_BQKV:_ROW_BQKV + 1, 0:QKV_DIM]              # (1, 48)
    wc_row = p[_ROW_WC:_ROW_WC + 1, 0:V_DIM]                  # (1, 16)
    bc = p[_ROW_BC:_ROW_BC + 1, 0:1]                          # (1, 1)

    x = x_ref[...]                                            # (N, 3)
    n = x.shape[0]                                            # static

    # feature_extractor: Linear(3,64) -> ReLU -> Linear(64,32) -> ReLU
    h1 = jnp.maximum(
        jnp.dot(x, w1, preferred_element_type=jnp.float32) + b1, 0.0)   # (N, 64)
    H = jnp.maximum(
        jnp.dot(h1, w2, preferred_element_type=jnp.float32) + b2, 0.0)  # (N, 32)

    # fused Q/K/V projection: one MXU push instead of three
    qkv = jnp.dot(H, wqkv, preferred_element_type=jnp.float32) + bqkv   # (N, 48)
    q = qkv[:, 0:K_DIM]                      # already scaled by 1/sqrt(K)
    k = qkv[:, K_DIM:2 * K_DIM]
    v = qkv[:, 2 * K_DIM:QKV_DIM]

    # scores = (Q/sqrt(K)) @ K^T  (NT dot_general, no explicit transpose)
    scores = lax.dot_general(
        q, k, (((1,), (1,)), ((), ())), preferred_element_type=jnp.float32)  # (N, N)

    # softmax stats (attn itself is never materialized)
    m = jnp.max(scores, axis=-1, keepdims=True)
    e = jnp.exp(scores - m)                                   # (N, N)
    l = jnp.sum(e, axis=-1, keepdims=True)                    # (N, 1)
    r = pl.reciprocal(l, approx=False)                        # exact; (N,1) is cheap

    # A_j = (1/N) * sum_i e_ij / l_i  ->  (1/N) * (r^T @ e) as one TN MXU mat-vec
    a = lax.dot_general(
        r, e, (((0,), (0,)), ((), ())),
        preferred_element_type=jnp.float32) * (1.0 / n)       # (1, N)

    # Z = A @ V ; classifier Linear(16,1) + sigmoid
    z = jnp.dot(a, v, preferred_element_type=jnp.float32)     # (1, 16)
    logit = jnp.sum(z * wc_row, axis=-1, keepdims=True) + bc  # (1, 1)
    y_prob = 1.0 / (1.0 + jnp.exp(-logit))

    yprob_ref[...] = y_prob
    a_ref[...] = a
    # NOTE: Y_hat (>= 0.5 threshold) is computed outside the kernel on purpose.


def init_params(key):
    """PyTorch-nn.Linear-style init (uniform +-1/sqrt(fan_in)); weights stored (in, out)."""
    def linear(k, fan_in, fan_out):
        kw, kb = jax.random.split(k)
        bound = 1.0 / (fan_in ** 0.5)
        w = jax.random.uniform(kw, (fan_in, fan_out), jnp.float32, -bound, bound)
        b = jax.random.uniform(kb, (1, fan_out), jnp.float32, -bound, bound)
        return w, b

    keys = jax.random.split(key, 6)
    w1, b1 = linear(keys[0], INPUT_DIM, LINEAR1)     # feature_extractor[0]
    w2, b2 = linear(keys[1], LINEAR1, M_DIM)         # feature_extractor[2]
    wq, bq = linear(keys[2], M_DIM, K_DIM)           # query_layer
    wk, bk = linear(keys[3], M_DIM, K_DIM)           # key_layer
    wv, bv = linear(keys[4], M_DIM, V_DIM)           # value_layer
    wc, bc = linear(keys[5], V_DIM, 1)               # classifier[0]
    return (w1, b1, w2, b2, wq, bq, wk, bk, wv, bv, wc, bc)


def pack_params(params):
    """Pack all parameters into one lane-dense (104, 128) f32 slab (single DMA),
    fusing Q/K/V weights and folding the 1/sqrt(K) score scale into the Q slice."""
    (w1, b1, w2, b2, wq, bq, wk, bk, wv, bv, wc, bc) = params
    scale = 1.0 / (K_DIM ** 0.5)
    wqkv = jnp.concatenate([wq * scale, wk, wv], axis=1)   # (32, 48)
    bqkv = jnp.concatenate([bq * scale, bk, bv], axis=1)   # (1, 48)

    slab = jnp.zeros((PACK_ROWS, PACK_LANES), jnp.float32)
    slab = slab.at[_ROW_W1:_ROW_W1 + INPUT_DIM, 0:LINEAR1].set(w1)
    slab = slab.at[_ROW_B1:_ROW_B1 + 1, 0:LINEAR1].set(b1)
    slab = slab.at[_ROW_BQKV:_ROW_BQKV + 1, 0:QKV_DIM].set(bqkv)
    slab = slab.at[_ROW_B2:_ROW_B2 + 1, 0:M_DIM].set(b2)
    slab = slab.at[_ROW_WC:_ROW_WC + 1, 0:V_DIM].set(wc.T)
    slab = slab.at[_ROW_BC:_ROW_BC + 1, 0:1].set(bc)
    slab = slab.at[_ROW_W2:_ROW_W2 + LINEAR1, 0:M_DIM].set(w2)
    slab = slab.at[_ROW_WQKV:_ROW_WQKV + M_DIM, 0:QKV_DIM].set(wqkv)
    return slab


def _vmem_limit_bytes(n):
    """Generation-aware VMEM budget: 3*N^2 live f32 buffers + activations + slab,
    clamped to ~2/3 of physical VMEM (headroom for compiler scratch / buffers)."""
    per_bag = 4 * (3 * n * n + n * (INPUT_DIM + LINEAR1 + M_DIM + QKV_DIM + 4))
    fixed = 4 * PACK_ROWS * PACK_LANES + (2 << 20)   # slab + margin
    need = per_bag + fixed
    try:
        info = pltpu.get_tpu_info()
        phys = int(getattr(info, "vmem_capacity_bytes", 0)) or (64 << 20)
    except Exception:  # pragma: no cover - conservative fallback
        phys = 64 << 20
    clamp = (2 * phys) // 3
    # TODO(synk): if `need > clamp` dispatch to the query-row-tiled flash path
    # instead of clamping (deterministic large-N behavior).
    return int(min(max(need, 16 << 20), clamp))


@jax.jit
def mt_clip_forward_batched(xs, param_slab):
    """xs: (B, N, INPUT_DIM) — B independent bags, one per grid step."""
    B, n, _ = xs.shape
    vmem_limit = _vmem_limit_bytes(n)

    flops_per_bag = (2 * n * (INPUT_DIM * LINEAR1 + LINEAR1 * M_DIM + M_DIM * QKV_DIM)
                     + 2 * n * n * K_DIM        # scores
                     + 2 * n * n                # A mat-vec
                     + 2 * n * V_DIM)           # Z
    cost = pl.CostEstimate(
        flops=int(B * flops_per_bag),
        transcendentals=int(B * (n * n + n + 1)),
        bytes_accessed=int(xs.size * 4 + PACK_ROWS * PACK_LANES * 4
                           + B * (n + 1) * 4),
    )

    out_shapes = (
        jax.ShapeDtypeStruct((B, 1, 1), jnp.float32),   # Y_prob per bag
        jax.ShapeDtypeStruct((B, 1, n), jnp.float32),   # A per bag
    )
    y_prob, a = pl.pallas_call(
        _mt_clip_kernel,
        out_shape=out_shapes,
        grid=(B,),
        in_specs=[
            # one bag per grid step; leading bag dim squeezed out of the kernel ref
            pl.BlockSpec((None, n, INPUT_DIM), lambda b: (b, 0, 0)),
            # parameter slab: same block every step -> stays resident in VMEM
            pl.BlockSpec((PACK_ROWS, PACK_LANES), lambda b: (0, 0)),
        ],
        out_specs=(
            pl.BlockSpec((None, 1, 1), lambda b: (b, 0, 0)),
            pl.BlockSpec((None, 1, n), lambda b: (b, 0, 0)),
        ),
        compiler_params=pltpu.CompilerParams(
            dimension_semantics=("parallel",),      # bag axis -> 2 TCs on v7x
            vmem_limit_bytes=vmem_limit,
        ),
        cost_estimate=cost,
    )(xs, param_slab)

    y_prob = y_prob.reshape(B, 1)
    a = a.reshape(B, n)
    # Threshold outside the kernel (saves a per-call writeback DMA + masked store).
    y_hat = (y_prob >= 0.5).astype(jnp.float32)
    return y_prob, y_hat, a


def mt_clip_forward(x, param_slab):
    """Matches PyTorch MT_Clip.forward: x (1, N, INPUT_DIM) -> (Y_prob, Y_hat, A)."""
    return mt_clip_forward_batched(x, param_slab)   # B = 1


def _reference_forward(x, params):
    (w1, b1, w2, b2, wq, bq, wk, bk, wv, bv, wc, bc) = params
    x2d = jnp.squeeze(x, axis=0)
    h1 = jnp.maximum(x2d @ w1 + b1, 0.0)
    H = jnp.maximum(h1 @ w2 + b2, 0.0)
    Q, K, V = H @ wq + bq, H @ wk + bk, H @ wv + bv
    scores = (Q @ K.T) / (K_DIM ** 0.5)
    attn = jax.nn.softmax(scores, axis=-1)
    A = jnp.mean(attn, axis=0, keepdims=True)
    Z = A @ V
    y_prob = jax.nn.sigmoid(Z @ wc + bc)
    y_hat = (y_prob >= 0.5).astype(jnp.float32)
    return y_prob, y_hat, A


if __name__ == "__main__":
    key = jax.random.PRNGKey(0)
    k_params, k_x, k_xb = jax.random.split(key, 3)

    params = init_params(k_params)
    slab = pack_params(params)

    # --- single-bag path (exactly the PyTorch module's forward) ---------------
    N = 8  # number of instances in the "bag"
    x = jax.random.normal(k_x, (1, N, INPUT_DIM), jnp.float32)

    y_prob, y_hat, a = mt_clip_forward(x, slab)
    jax.block_until_ready((y_prob, y_hat, a))

    ref_prob, ref_hat, ref_a = _reference_forward(x, params)
    assert y_prob.shape == (1, 1) and y_hat.shape == (1, 1) and a.shape == (1, N)
    assert jnp.allclose(y_prob, ref_prob, rtol=1e-3, atol=1e-6), (y_prob, ref_prob)
    assert jnp.allclose(a, ref_a, rtol=1e-3, atol=1e-6), (a, ref_a)
    # threshold can only disagree if the probability is essentially on the boundary
    assert bool(jnp.all((y_hat == ref_hat) | (jnp.abs(ref_prob - 0.5) < 1e-4)))

    # --- batched path: B bags in one pallas_call (launch cost amortized) ------
    B = 4
    xb = jax.random.normal(k_xb, (B, N, INPUT_DIM), jnp.float32)
    yb_prob, yb_hat, ab = mt_clip_forward_batched(xb, slab)
    jax.block_until_ready((yb_prob, yb_hat, ab))
    for b in range(B):
        rp, rh, ra = _reference_forward(xb[b:b + 1], params)
        assert jnp.allclose(yb_prob[b:b + 1], rp, rtol=1e-3, atol=1e-6)
        assert jnp.allclose(ab[b:b + 1], ra, rtol=1e-3, atol=1e-6)
        assert bool(jnp.all((yb_hat[b:b + 1] == rh) | (jnp.abs(rp - 0.5) < 1e-4)))

    print("KERNEL_OK")
</pallas_src>

<mosaic_0001>
module attributes {stable_mosaic.version = 11 : i64} {
  func.func @_mt_clip_kernel(%arg0: i32, %arg1: memref<1x8x3xf32, #tpu.memory_space<vmem>>, %arg2: memref<104x128xf32, #tpu.memory_space<vmem>>, %arg3: memref<1x1x1xf32, #tpu.memory_space<vmem>>, %arg4: memref<1x1x8xf32, #tpu.memory_space<vmem>>) attributes {dimension_semantics = [#tpu.dimension_semantics<parallel>], iteration_bounds = array<i64: 1>, scalar_prefetch = 0 : i64, scratch_operands = 0 : i64, tpu.core_type = #tpu.core_type<tc>, window_params = [{transform_indices = @transform_0, window_bounds = array<i64: 1, 8, 3>}, {pipeline_mode = #tpu.pipeline_mode<synchronous>, transform_indices = @transform_1, window_bounds = array<i64: 104, 128>}, {transform_indices = @transform_2, window_bounds = array<i64: 1, 1, 1>}, {transform_indices = @transform_3, window_bounds = array<i64: 1, 1, 8>}]} {
    %c0 = arith.constant 0 : index
    %c0_0 = arith.constant 0 : index
    %0 = vector.load %arg2[%c0, %c0_0] : memref<104x128xf32, #tpu.memory_space<vmem>>, vector<3x64xf32>
    %c3 = arith.constant 3 : index
    %c0_1 = arith.constant 0 : index
    %1 = vector.load %arg2[%c3, %c0_1] : memref<104x128xf32, #tpu.memory_space<vmem>>, vector<1x64xf32>
    %c8 = arith.constant 8 : index
    %c0_2 = arith.constant 0 : index
    %2 = vector.load %arg2[%c8, %c0_2] : memref<104x128xf32, #tpu.memory_space<vmem>>, vector<64x32xf32>
    %c5 = arith.constant 5 : index
    %c0_3 = arith.constant 0 : index
    %3 = vector.load %arg2[%c5, %c0_3] : memref<104x128xf32, #tpu.memory_space<vmem>>, vector<1x32xf32>
    %c72 = arith.constant 72 : index
    %c0_4 = arith.constant 0 : index
    %4 = vector.load %arg2[%c72, %c0_4] : memref<104x128xf32, #tpu.memory_space<vmem>>, vector<32x48xf32>
    %c4 = arith.constant 4 : index
    %c0_5 = arith.constant 0 : index
    %5 = vector.load %arg2[%c4, %c0_5] : memref<104x128xf32, #tpu.memory_space<vmem>>, vector<1x48xf32>
    %c6 = arith.constant 6 : index
    %c0_6 = arith.constant 0 : index
    %6 = vector.load %arg2[%c6, %c0_6] : memref<104x128xf32, #tpu.memory_space<vmem>>, vector<1x16xf32>
    %c7 = arith.constant 7 : index
    %c0_7 = arith.constant 0 : index
    %7 = vector.load %arg2[%c7, %c0_7] : memref<104x128xf32, #tpu.memory_space<vmem>>, vector<1x1xf32>
    %c0_8 = arith.constant 0 : index
    %c0_9 = arith.constant 0 : index
    %c0_10 = arith.constant 0 : index
    %8 = vector.load %arg1[%c0_8, %c0_9, %c0_10] : memref<1x8x3xf32, #tpu.memory_space<vmem>>, vector<1x8x3xf32>
    %9 = vector.shape_cast %8 : vector<1x8x3xf32> to vector<8x3xf32>
    %cst = arith.constant dense<0.000000e+00> : vector<8x64xf32>
    %10 = tpu.matmul %9, %0, %cst {dimension_numbers = #tpu.dot_dimension_numbers<[1], [0], [0], [1], [0, 0, 1, 1], [], []>} : vector<8x3xf32>, vector<3x64xf32>, vector<8x64xf32> -> vector<8x64xf32>
    %11 = vector.broadcast %1 : vector<1x64xf32> to vector<8x64xf32>
    %12 = arith.addf %10, %11 : vector<8x64xf32>
    %cst_11 = arith.constant 0.000000e+00 : f32
    %13 = vector.broadcast %cst_11 : f32 to vector<8x64xf32>
    %14 = arith.maximumf %12, %13 : vector<8x64xf32>
    %cst_12 = arith.constant dense<0.000000e+00> : vector<8x32xf32>
    %15 = tpu.matmul %14, %2, %cst_12 {dimension_numbers = #tpu.dot_dimension_numbers<[1], [0], [0], [1], [0, 0, 1, 1], [], []>} : vector<8x64xf32>, vector<64x32xf32>, vector<8x32xf32> -> vector<8x32xf32>
    %16 = vector.broadcast %3 : vector<1x32xf32> to vector<8x32xf32>
    %17 = arith.addf %15, %16 : vector<8x32xf32>
    %cst_13 = arith.constant 0.000000e+00 : f32
    %18 = vector.broadcast %cst_13 : f32 to vector<8x32xf32>
    %19 = arith.maximumf %17, %18 : vector<8x32xf32>
    %cst_14 = arith.constant dense<0.000000e+00> : vector<8x48xf32>
    %20 = tpu.matmul %19, %4, %cst_14 {dimension_numbers = #tpu.dot_dimension_numbers<[1], [0], [0], [1], [0, 0, 1, 1], [], []>} : vector<8x32xf32>, vector<32x48xf32>, vector<8x48xf32> -> vector<8x48xf32>
    %21 = vector.broadcast %5 : vector<1x48xf32> to vector<8x48xf32>
    %22 = arith.addf %20, %21 : vector<8x48xf32>
    %23 = vector.extract_strided_slice %22 {offsets = [0, 0], sizes = [8, 16], strides = [1, 1]} : vector<8x48xf32> to vector<8x16xf32>
    %24 = vector.extract_strided_slice %22 {offsets = [0, 16], sizes = [8, 16], strides = [1, 1]} : vector<8x48xf32> to vector<8x16xf32>
    %25 = vector.extract_strided_slice %22 {offsets = [0, 32], sizes = [8, 16], strides = [1, 1]} : vector<8x48xf32> to vector<8x16xf32>
    %cst_15 = arith.constant dense<0.000000e+00> : vector<8x8xf32>
    %26 = tpu.matmul %23, %24, %cst_15 {dimension_numbers = #tpu.dot_dimension_numbers<[1], [1], [0], [0], [0, 0, 1, 0], [], []>} : vector<8x16xf32>, vector<8x16xf32>, vector<8x8xf32> -> vector<8x8xf32>
    %cst_16 = arith.constant dense<0xFF800000> : vector<8xf32>
    %27 = vector.multi_reduction <maximumf>, %26, %cst_16 [1] : vector<8x8xf32> to vector<8xf32>
    %28 = vector.shape_cast %27 : vector<8xf32> to vector<8x1xf32>
    %29 = vector.broadcast %28 : vector<8x1xf32> to vector<8x8xf32>
    %30 = arith.subf %26, %29 : vector<8x8xf32>
    %31 = math.exp %30 : vector<8x8xf32>
    %cst_17 = arith.constant dense<0.000000e+00> : vector<8xf32>
    %32 = vector.multi_reduction <add>, %31, %cst_17 [1] : vector<8x8xf32> to vector<8xf32>
    %33 = vector.shape_cast %32 : vector<8xf32> to vector<8x1xf32>
    %34 = tpu.reciprocal %33 : vector<8x1xf32> -> vector<8x1xf32>
    %cst_18 = arith.constant dense<0.000000e+00> : vector<1x8xf32>
    %35 = tpu.matmul %34, %31, %cst_18 {dimension_numbers = #tpu.dot_dimension_numbers<[0], [0], [1], [1], [0, 1, 1, 1], [], []>} : vector<8x1xf32>, vector<8x8xf32>, vector<1x8xf32> -> vector<1x8xf32>
    %cst_19 = arith.constant 1.250000e-01 : f32
    %36 = vector.broadcast %cst_19 : f32 to vector<1x8xf32>
    %37 = arith.mulf %35, %36 : vector<1x8xf32>
    %cst_20 = arith.constant dense<0.000000e+00> : vector<1x16xf32>
    %38 = tpu.matmul %37, %25, %cst_20 {dimension_numbers = #tpu.dot_dimension_numbers<[1], [0], [0], [1], [0, 0, 1, 1], [], []>} : vector<1x8xf32>, vector<8x16xf32>, vector<1x16xf32> -> vector<1x16xf32>
    %39 = arith.mulf %38, %6 : vector<1x16xf32>
    %cst_21 = arith.constant dense<0.000000e+00> : vector<1xf32>
    %40 = vector.multi_reduction <add>, %39, %cst_21 [1] : vector<1x16xf32> to vector<1xf32>
    %41 = vector.shape_cast %40 : vector<1xf32> to vector<1x1xf32>
    %42 = arith.addf %41, %7 : vector<1x1xf32>
    %cst_22 = arith.constant 0.000000e+00 : f32
    %43 = vector.broadcast %cst_22 : f32 to vector<1x1xf32>
    %44 = arith.subf %43, %42 : vector<1x1xf32>
    %45 = math.exp %44 : vector<1x1xf32>
    %cst_23 = arith.constant 1.000000e+00 : f32
    %46 = vector.broadcast %cst_23 : f32 to vector<1x1xf32>
    %47 = arith.addf %46, %45 : vector<1x1xf32>
    %cst_24 = arith.constant 1.000000e+00 : f32
    %48 = vector.broadcast %cst_24 : f32 to vector<1x1xf32>
    %49 = arith.divf %48, %47 : vector<1x1xf32>
    %c0_25 = arith.constant 0 : index
    %c0_26 = arith.constant 0 : index
    %c0_27 = arith.constant 0 : index
    %50 = vector.load %arg3[%c0_25, %c0_26, %c0_27] : memref<1x1x1xf32, #tpu.memory_space<vmem>>, vector<1x1x1xf32>
    %51 = vector.shape_cast %50 : vector<1x1x1xf32> to vector<1x1xf32>
    %52 = vector.shape_cast %49 : vector<1x1xf32> to vector<1x1x1xf32>
    tpu.vector_store %arg3[%c0_25, %c0_26, %c0_27], %52 {strides = array<i32>} : memref<1x1x1xf32, #tpu.memory_space<vmem>>, vector<1x1x1xf32>,
    %c0_28 = arith.constant 0 : index
    %c0_29 = arith.constant 0 : index
    %c0_30 = arith.constant 0 : index
    %53 = vector.load %arg4[%c0_28, %c0_29, %c0_30] : memref<1x1x8xf32, #tpu.memory_space<vmem>>, vector<1x1x8xf32>
    %54 = vector.shape_cast %53 : vector<1x1x8xf32> to vector<1x8xf32>
    %55 = vector.shape_cast %37 : vector<1x8xf32> to vector<1x1x8xf32>
    tpu.vector_store %arg4[%c0_28, %c0_29, %c0_30], %55 {strides = array<i32>} : memref<1x1x8xf32, #tpu.memory_space<vmem>>, vector<1x1x8xf32>,
    return
  }
  func.func @transform_0(%arg0: i32) -> (i32, i32, i32) {
    %c0_i32 = arith.constant 0 : i32
    %c0_i32_0 = arith.constant 0 : i32
    %c0_i32_1 = arith.constant 0 : i32
    return %arg0, %c0_i32, %c0_i32_0 : i32, i32, i32
  }
  func.func @transform_1(%arg0: i32) -> (i32, i32) {
    %c0_i32 = arith.constant 0 : i32
    %c0_i32_0 = arith.constant 0 : i32
    %c0_i32_1 = arith.constant 0 : i32
    return %c0_i32, %c0_i32_0 : i32, i32
  }
  func.func @transform_2(%arg0: i32) -> (i32, i32, i32) {
    %c0_i32 = arith.constant 0 : i32
    %c0_i32_0 = arith.constant 0 : i32
    %c0_i32_1 = arith.constant 0 : i32
    return %arg0, %c0_i32, %c0_i32_0 : i32, i32, i32
  }
  func.func @transform_3(%arg0: i32) -> (i32, i32, i32) {
    %c0_i32 = arith.constant 0 : i32
    %c0_i32_0 = arith.constant 0 : i32
    %c0_i32_1 = arith.constant 0 : i32
    return %arg0, %c0_i32, %c0_i32_0 : i32, i32, i32
  }
}

</mosaic_0001>

<bundles_post_ra>
// kernel: mt_clip_forward_batched.1
= control target key start
LH: loop header
LB: loop body
LE: loop exit
PB: predicated region body
PF: predicated region fallthrough
CT: control target
= control target key end

     0   :  { %9 = vsyncpa [#allocation3], 0  ;;  %s475_s0 = inlined_call_operand.vmem [shape: f32[1,8,3], index: 0, kind: input, shape index: {}]   ;;  %s476_s1 = inlined_call_operand.hbm [shape: f32[104,128], index: 1, kind: input, shape index: {}]   ;;  %s477_s2 = inlined_call_operand.hbm [shape: f32[1,1,1], index: 2, kind: output, shape index: {0}]   ;;  %s478_s3 = inlined_call_operand.hbm [shape: f32[1,1,8], index: 3, kind: output, shape index: {1}]  }
   0x1   :  { %10 = vsyncpa [#allocation4], 0 }
   0x2   :  { %11 = vsyncpa [#allocation7], 0  ;;  %s18_s14 = sshll.u32 %s476_s1, 4  ;;  %s432_s15 = smov [#allocation2]   ;;  %s19_s14 = int_to_ptr.hbm [resolvable:$true] %s18_s14 }
   0x3   :  { %s20_s16 = sshll.u32 %s432_s15, 4  ;;  %s433_s17 = smov 128   ;;  %s21_s16 = int_to_ptr.vmem [resolvable:$true] %s20_s16 }
   0x4   :  { %s434_s18 = smov 8  }
   0x5   :  { %26 = dma.hbm_to_vmem [thread:$0]  %s19_s14, 1664, %s21_s16, [#allocation3], %s433_s17, %s433_s17, %s434_s18  }
   0x6   :  { %426 = dma.done.wait [#allocation3], 1664  }
   0x7   :  { %427 = vsyncadd [#allocation3], 4294965632  ;;  %vm55_vm0 = vcmask 1042432   ;;  %vm51_vm1 = vcmask 23552   ;;  %v31_v0 = vld [vmem:[#allocation2] sm:$0x7] }
   0x8   :  { %v49_v1 = vld [vmem:[%s475_s0] sm:$0xff]  ;;  %327 = vmatpush.msk.msra.mxu0 %vm55_vm0, %v31_v0  ;;  %v39_v3 = vld [vmem:[#allocation2 + $0x38] sm:$0xff]  ;;  %v38_v4 = vld [vmem:[#allocation2 + $0x30] sm:$0xff]  ;;  %vm81_vm2 = vcmask 523264   ;;  %vm107_vm3 = vcmask 261120   ;;  %s435_s0 = smov 96  }
   0x9   :  { %v40_v2 = vld [vmem:[#allocation2 + $0x40] sm:$0xff]  ;;  %328 = vmatmul.msk.f32.vlgmr.msra.gmra.mxu0 %vm51_vm1, %v49_v1  ;;  %v37_v5 = vld [vmem:[#allocation2 + $0x28] sm:$0xff]  ;;  %v35_v7 = vld [vmem:[#allocation2 + $0x18] sm:$0xff]  ;;  %s436_s1 = smov 112   ;;  %vm134_vm4 = vcmask 130048   ;;  %vm159_vm5 = vcmask 64512  }
   0xa   :  { %93 = vmatpush.msra.mxu1 %v40_v2  ;;  %v36_v6 = vld [vmem:[#allocation2 + $0x20] sm:$0xff]  ;;  %v34_v8 = vld [vmem:[#allocation2 + $0x10] sm:$0xff]  ;;  %v33_v9 = vld [vmem:[#allocation2 + $0x8] sm:$0xff]  ;;  %vm292_vm10 = vcmask 57344   ;;  %vm266_vm11 = vcmask 122880   ;;  %s437_s21 = smov [#allocation6]  }
   0xb   :  { %v45_v10 = vld [vmem:[#allocation2 + $0x60] sm:$0xff]  ;;  %v44_v15 = vld [vmem:[#allocation2 + $0x58] sm:$0xff]  ;;  %v43_v16 = vld [vmem:[#allocation2 + $0x50] sm:$0xff]  ;;  %s310_s22 = sshll.u32 %s437_s21, 4  ;;  %s312_s25 = sshll.u32 %s478_s3, 4  ;;  %vm290_vm15 = vcmask 0   ;;  %s311_s22 = int_to_ptr.vmem [resolvable:$true] %s310_s22  ;;  %s313_s25 = int_to_ptr.hbm [resolvable:$true] %s312_s25 }
   0xc   :  { %94 = vmatpush.msra.mxu1 %v39_v3  ;;  %123 = vmatpush.msra.mxu2 %v45_v10  ;;  %v343_v11 = vld [vmem:[#allocation2 + $0x3] ss:$0 sm:$0xff]  ;;  %v42_v17 = vld [vmem:[#allocation2 + $0x48] sm:$0xff]  ;;  %v344_v18 = vld [vmem:[#allocation2 + $0x5] ss:$0 sm:$0xff]  ;;  %s438_s3 = smov [#allocation5]  }
   0xd   :  { %v345_v22 = vld [vmem:[#allocation2 + $0x4] ss:$0 sm:$0xff]  ;;  %v47_v48 = vld [vmem:[#allocation2 + $0x6] sm:$0x1]  ;;  %v48_v52 = vld [vmem:[#allocation2 + $0x7] sm:$0x1] }
   0xe   :  { %95 = vmatpush.msra.mxu1 %v38_v4  ;;  %124 = vmatpush.msra.mxu2 %v44_v15  ;;  %s299_s26 = sshll.u32 %s438_s3, 4  ;;  %s301_s29 = sshll.u32 %s477_s2, 4  ;;  %s300_s26 = int_to_ptr.vmem [resolvable:$true] %s299_s26  ;;  %s302_s29 = int_to_ptr.hbm [resolvable:$true] %s301_s29 }
  0x10   :  { %96 = vmatpush.msra.mxu1 %v37_v5  ;;  %125 = vmatpush.msra.mxu2 %v43_v16 }
  0x12   :  { %97 = vmatpush.msra.mxu1 %v36_v6  ;;  %126 = vmatpush.msra.mxu2 %v42_v17 }
  0x14   :  { %98 = vmatpush.msra.mxu1 %v35_v7 }
  0x16   :  { %99 = vmatpush.msra.mxu1 %v34_v8 }
  0x18   :  { %100 = vmatpush.msra.mxu1 %v33_v9 }
  0x86   :  { %v76_v12 = vpop.f32.mrf.mxu0 }
  0x87   :  { %v77_v13 = vadd.f32 %v343_v11, %v76_v12 }
  0x89   :  { %v79_v14 = vmax.f32 %v77_v13, 0.0 }
  0x8b   :  { %329 = vmatmul.msk.f32.vlgmr.msra.gmra.mxu1 %vm81_vm2, %v79_v14 }
 0x108   :  { %v102_v19 = vpop.f32.mrf.mxu1 }
 0x109   :  { %v103_v20 = vadd.f32 %v344_v18, %v102_v19 }
 0x10b   :  { %v105_v21 = vmax.f32 %v103_v20, 0.0 }
 0x10d   :  { %330 = vmatmul.msk.f32.vlgmr.msra.gmra.mxu2 %vm107_vm3, %v105_v21 }
 0x190   :  { %v128_v23 = vpop.f32.mrf.mxu2 }
 0x191   :  { %v129_v24 = vadd.f32 %v345_v22, %v128_v23 }
 0x193   :  { %239 = vrot.lane.b32.xlu2 %v129_v24, %s435_s0  ;;  %132 = vrot.lane.b32.xlu0 %v129_v24, %s436_s1 }
 0x1ed   :  { %v240_v26 = vpop.permute.xlu2 %239 }
 0x205   :  { %v133_v25 = vpop.permute.xlu0 %132 }
 0x206   :  { %331 = vmatpush.xpose.msk.msra.mxu3 %vm134_vm4, %v133_v25 }
 0x209   :  { %332 = vmatmul.msk.f32.vlgmr.msra.gmra.mxu3 %vm134_vm4, %v129_v24 }
 0x20a   :  { %260 = vmatpush.msrb.mxu3 %v240_v26 }
 0x28c   :  { %v156_v27 = vpop.f32.mrf.mxu3 }
 0x28d   :  { %v160_v28 = vsel %vm159_vm5, %v156_v27, -inf }
 0x28e   :  { %161 = vmax.xlane.f32.xlu0 %v160_v28 }
 0x301   :  { %v162_v29 = vpop.xlane.xlu0 %161 }
 0x302   :  { %v163_v30 = vsub.f32 %v156_v27, %v162_v29 }
 0x304   :  { %v164_v31 = vmul.f32 1.442695, %v163_v30 }
 0x306   :  { %346 = vpow2.f32 %v164_v31 }
 0x30c   :  { %v347_v32 = vpop.eup %346 }
 0x30d   :  { %233 = vmatpush.msrb.mxu0 %v347_v32  ;;  %v166_v33 = vsel %vm159_vm5, %v347_v32, 0.0 }
 0x30e   :  { %167 = vadd.xlane.f32.xlu1 %v166_v33 }
 0x381   :  { %v168_v34 = vpop.xlane.xlu1 %167 }
 0x382   :  { %348 = vrcp.f32 %v168_v34  ;;  %v180_v38 = vand.u32 2147483648, %v168_v34  ;;  %v178_v40 = vand.u32 2147483647, %v168_v34  ;;  %vm174_vm7 = vweird.f32 %v168_v34 }
 0x384   :  { %v181_v42 = vor.u32 1.1754944e-38, %v180_v38  ;;  %vm179_vm9 = vcmp.eq.f32.partialorder %v178_v40, 8.507059e+37 }
 0x388   :  { %v349_v35 = vpop.eup %348 }
 0x389   :  { %v170_v36 = vmul.f32 %v349_v35, %v168_v34  ;;  %vm175_vm6 = vweird.f32 %v349_v35 }
 0x38a   :  { %vm176_vm8 = vmor %vm174_vm7, %vm175_vm6 }
 0x38b   :  { %v171_v37 = vsub.f32 1.0, %v170_v36 }
 0x38d   :  { %v172_v39 = vmul.f32 %v349_v35, %v171_v37 }
 0x38f   :  { %v173_v41 = vadd.f32 %v349_v35, %v172_v39 }
 0x391   :  { %v177_v43 = vsel %vm176_vm8, %v349_v35, %v173_v41 }
 0x392   :  { %v182_v44 = vsel %vm179_vm9, %v181_v42, %v177_v43 }
 0x393   :  { %183 = vxpose.xlu1.b32.start.end [1/1] (short) (narrow) %v182_v44, 8 }
 0x437   :  { %v199_v45 = vpop.trf.xlu1 }
 0x438   :  { %333 = vmatmul.msk.f32.vlgmr.msrb.gmra.mxu0 %vm159_vm5, %v199_v45 }
 0x4b5   :  { %v235_v46 = vpop.f32.mrf.mxu0 }
 0x4b6   :  { %v238_v47 = vmul.f32 0.125, %v235_v46 }
 0x4b8   :  { %334 = vmatmul.msk.f32.vlgmr.msrb.gmra.mxu3 %vm159_vm5, %v238_v47  ;;  %293 = vst.msk [vmem:[#allocation6] sm:$0x1] %vm292_vm10, %v238_v47 }
 0x4b9   :  { %315 = dma.vmem_to_hbm [thread:$0]  %s311_s22, 16, %s313_s25, [#allocation7]  }
 0x53b   :  { %v262_v49 = vpop.f32.mrf.mxu3 }
 0x53c   :  { %v265_v50 = vmul.f32 %v262_v49, %v47_v48 }
 0x53e   :  { %v267_v51 = vsel %vm266_vm11, %v265_v50, 0.0 }
 0x53f   :  { %268 = vadd.xlane.f32.xlu2 %v267_v51 }
 0x5b2   :  { %v269_v53 = vpop.xlane.xlu2 %268 }
 0x5b3   :  { %v270_v54 = vadd.f32 %v269_v53, %v48_v52 }
 0x5b5   :  { %v271_v55 = vsub.f32 0.0, %v270_v54 }
 0x5b7   :  { %v272_v56 = vmul.f32 1.442695, %v271_v55 }
 0x5b9   :  { %350 = vpow2.f32 %v272_v56 }
 0x5bf   :  { %v351_v57 = vpop.eup %350 }
 0x5c0   :  { %v274_v58 = vadd.f32 1.0, %v351_v57 }
 0x5c2   :  { %352 = vrcp.f32 %v274_v58  ;;  %v286_v62 = vand.u32 2147483648, %v274_v58  ;;  %v284_v0 = vand.u32 2147483647, %v274_v58  ;;  %vm280_vm13 = vweird.f32 %v274_v58 }
 0x5c4   :  { %v287_v2 = vor.u32 1.1754944e-38, %v286_v62  ;;  %vm285_vm0 = vcmp.eq.f32.partialorder %v284_v0, 8.507059e+37 }
 0x5c8   :  { %v353_v59 = vpop.eup %352 }
 0x5c9   :  { %v276_v60 = vmul.f32 %v353_v59, %v274_v58  ;;  %vm281_vm12 = vweird.f32 %v353_v59 }
 0x5ca   :  { %vm282_vm14 = vmor %vm280_vm13, %vm281_vm12 }
 0x5cb   :  { %v277_v61 = vsub.f32 1.0, %v276_v60 }
 0x5cd   :  { %v278_v63 = vmul.f32 %v353_v59, %v277_v61 }
 0x5cf   :  { %v279_v1 = vadd.f32 %v353_v59, %v278_v63 }
 0x5d1   :  { %v283_v3 = vsel %vm282_vm14, %v353_v59, %v279_v1 }
 0x5d2   :  { %v288_v4 = vsel %vm285_vm0, %v287_v2, %v283_v3 }
 0x5d3   :  { %291 = vst.msk [vmem:[#allocation5] sm:$0x1] %vm290_vm15, %v288_v4 }
 0x5d4   :  { %304 = dma.vmem_to_hbm [thread:$0]  %s300_s26, 16, %s302_s29, [#allocation4]  }
 0x5d5   :  { %428 = dma.done.wait [#allocation4], 16  }
 0x5d6   :  { %429 = vsyncadd [#allocation4], 4294967280 }
 0x5d7   :  { %430 = dma.done.wait [#allocation7], 16  }
 0x5d8   :  { %431 = vsyncadd [#allocation7], 4294967280 }
 0x5d9   :  { %324 = vsyncpa [#allocation3], 1 }
 0x5da   :  { %325 = vsyncpa [#allocation4], 1 }
 0x5db   :  { %326 = vsyncpa [#allocation7], 1 }

</bundles_post_ra>
